<compile_context>
chip_gen: v6e
topology: v6e:2x2x1
jax: 0.10.0
libtpu: 0.0.40
codegen_flags: <defaults>
</compile_context>

<pallas_src>
import math
import functools

import jax
import jax.numpy as jnp
from jax.experimental import pallas as pl
from jax.experimental.pallas import tpu as pltpu


def _round_up(n, m):
    return ((n + m - 1) // m) * m


def _mlp_kernel(x_ref, w1_ref, b1_ref, w2_ref, b2_ref, o_ref, *,
                compute_dtype, tanh_dtype):
    # In-kernel downcast of x (VPU, hidden under MXU work). No-op for f32 compute.
    x = x_ref[...].astype(compute_dtype)

    # Layer 1: MXU matmul with f32 accumulation, f32 bias add, tanh on the EUP
    # (own VLIW slot).  tanh_dtype=bf16 is an optional v6e/v7x fast path.
    h32 = jnp.dot(x, w1_ref[...], preferred_element_type=jnp.float32) + b1_ref[...]
    h = jnp.tanh(h32.astype(tanh_dtype))

    # Layer 2: same structure; intermediate cast back to the matmul compute dtype.
    out32 = (jnp.dot(h.astype(compute_dtype), w2_ref[...],
                     preferred_element_type=jnp.float32) + b2_ref[...])
    o_ref[...] = jnp.tanh(out32.astype(tanh_dtype)).astype(o_ref.dtype)


@functools.partial(
    jax.jit,
    static_argnames=("batch_tile", "compute_dtype", "tanh_dtype", "out_dtype"))
def feature_extractor_forward(x, w1, b1, w2, b2, *,
                              batch_tile=1024,
                              compute_dtype=jnp.bfloat16,
                              tanh_dtype=jnp.float32,
                              out_dtype=None):
    """x: (B, state_size); w1: (state_size, H1); b1: (1, H1);
    w2: (H1, H2); b2: (1, H2).  Returns (B, H2) in out_dtype (default x.dtype)."""
    B, S = x.shape
    H1 = w1.shape[1]
    H2 = w2.shape[1]
    out_dtype = x.dtype if out_dtype is None else out_dtype

    # Tile selection: as large as possible (amortize ~0.35us/step overhead and
    # MXU weight pushes), but split into >=2 grid steps when B allows so both
    # v7x TensorCores get work.  Multiple of 8 for the (8,128) rule; ragged
    # batches are handled by Pallas edge-block masking (no pad / slice passes).
    tile = min(batch_tile, max(8, _round_up(pl.cdiv(B, 2), 8)))
    grid = (pl.cdiv(B, tile),)

    # Weights in the compute dtype (no-op if pre-cast via prepare_params);
    # biases stay f32 so the add lands directly on the f32 accumulator.
    w1c = w1.astype(compute_dtype)
    w2c = w2.astype(compute_dtype)
    b1f = b1.astype(jnp.float32)
    b2f = b2.astype(jnp.float32)

    w_item = jnp.dtype(compute_dtype).itemsize
    cost = pl.CostEstimate(
        flops=2 * B * (S * H1 + H1 * H2),
        transcendentals=B * (H1 + H2),
        bytes_accessed=(B * S * jnp.dtype(x.dtype).itemsize        # x (read in-place)
                        + (S * H1 + H1 * H2) * w_item              # W1, W2
                        + (H1 + H2) * 4                            # biases (f32)
                        + B * H2 * jnp.dtype(out_dtype).itemsize), # out
    )

    kernel = functools.partial(_mlp_kernel,
                               compute_dtype=compute_dtype,
                               tanh_dtype=tanh_dtype)

    return pl.pallas_call(
        kernel,
        out_shape=jax.ShapeDtypeStruct((B, H2), out_dtype),
        grid_spec=pltpu.PrefetchScalarGridSpec(
            num_scalar_prefetch=0,
            grid=grid,
            in_specs=[
                pl.BlockSpec((tile, S), lambda i: (i, 0)),   # x batch tile
                pl.BlockSpec((S, H1), lambda i: (0, 0)),     # W1 (VMEM resident)
                pl.BlockSpec((1, H1), lambda i: (0, 0)),     # b1 (resident, f32)
                pl.BlockSpec((H1, H2), lambda i: (0, 0)),    # W2 (VMEM resident)
                pl.BlockSpec((1, H2), lambda i: (0, 0)),     # b2 (resident, f32)
            ],
            out_specs=pl.BlockSpec((tile, H2), lambda i: (i, 0)),
        ),
        compiler_params=pltpu.CompilerParams(
            dimension_semantics=("parallel",),   # lets v7x shard tiles over 2 TCs
        ),
        cost_estimate=cost,
    )(x, w1c, b1f, w2c, b2f)


def prepare_params(w1, b1, w2, b2, compute_dtype=jnp.bfloat16):
    """One-time cast outside the per-call path: weights -> compute dtype,
    biases -> f32.  Makes the in-forward astype calls no-ops when params are
    reused across rollout steps (typical RL usage)."""
    return (w1.astype(compute_dtype), b1.astype(jnp.float32),
            w2.astype(compute_dtype), b2.astype(jnp.float32))


def init_params(key, state_size, hidsize1=512, hidsize2=256, dtype=jnp.float32):
    """Deterministic init mimicking torch.nn.Linear: U(-1/sqrt(fan_in), +1/sqrt(fan_in))."""
    k1, k2, k3, k4 = jax.random.split(key, 4)
    bound1 = 1.0 / math.sqrt(state_size)
    bound2 = 1.0 / math.sqrt(hidsize1)
    w1 = jax.random.uniform(k1, (state_size, hidsize1), dtype, -bound1, bound1)
    b1 = jax.random.uniform(k2, (1, hidsize1), dtype, -bound1, bound1)
    w2 = jax.random.uniform(k3, (hidsize1, hidsize2), dtype, -bound2, bound2)
    b2 = jax.random.uniform(k4, (1, hidsize2), dtype, -bound2, bound2)
    return w1, b1, w2, b2


def reference_forward(x, w1, b1, w2, b2):
    h = jnp.tanh(x @ w1 + b1)
    return jnp.tanh(h @ w2 + b2)


if __name__ == "__main__":
    key = jax.random.PRNGKey(0)
    k_params, k_x = jax.random.split(key)

    batch = 8
    state_size = 128          # flatland tree-obs style flat state vector
    hidsize1, hidsize2 = 512, 256

    w1, b1, w2, b2 = init_params(k_params, state_size, hidsize1, hidsize2)
    x = jax.random.normal(k_x, (batch, state_size), jnp.float32)
    ref = reference_forward(x, w1, b1, w2, b2)

    # 1) f32 compute path: exact-ish match vs reference.
    out_f32 = jax.block_until_ready(
        feature_extractor_forward(x, w1, b1, w2, b2, compute_dtype=jnp.float32))
    assert out_f32.shape == (batch, hidsize2)
    assert jnp.allclose(out_f32, ref, atol=1e-5, rtol=1e-5), "f32 mismatch vs. reference"

    # 2) Default bf16-operand / f32-accumulate path with pre-cast weights and a
    #    lane-dense bf16 output (half the writeback traffic): loose tolerance.
    w1c, b1c, w2c, b2c = prepare_params(w1, b1, w2, b2)
    out_bf16 = jax.block_until_ready(
        feature_extractor_forward(x, w1c, b1c, w2c, b2c, out_dtype=jnp.bfloat16))
    assert out_bf16.shape == (batch, hidsize2)
    assert jnp.allclose(out_bf16.astype(jnp.float32), ref, atol=3e-2, rtol=3e-2), \
        "bf16 mismatch vs. reference"

    # 3) Ragged batch (13 rows, not a multiple of the 8-row tile): exercises the
    #    no-pad / Pallas edge-block masking path (partial last block).
    x13 = jax.random.normal(jax.random.PRNGKey(1), (13, state_size), jnp.float32)
    out13 = jax.block_until_ready(
        feature_extractor_forward(x13, w1, b1, w2, b2, compute_dtype=jnp.float32))
    assert out13.shape == (13, hidsize2)
    assert jnp.allclose(out13, reference_forward(x13, w1, b1, w2, b2),
                        atol=1e-5, rtol=1e-5), "ragged-batch mismatch vs. reference"

    print("KERNEL_OK")
</pallas_src>

<mosaic_0001>
module attributes {stable_mosaic.version = 11 : i64} {
  func.func @_mlp_kernel(%arg0: i32, %arg1: memref<8x128xf32, #tpu.memory_space<vmem>>, %arg2: memref<128x512xf32, #tpu.memory_space<vmem>>, %arg3: memref<1x512xf32, #tpu.memory_space<vmem>>, %arg4: memref<512x256xf32, #tpu.memory_space<vmem>>, %arg5: memref<1x256xf32, #tpu.memory_space<vmem>>, %arg6: memref<8x256xf32, #tpu.memory_space<vmem>>) attributes {dimension_semantics = [#tpu.dimension_semantics<parallel>], iteration_bounds = array<i64: 1>, scalar_prefetch = 0 : i64, scratch_operands = 0 : i64, tpu.core_type = #tpu.core_type<tc>, window_params = [{transform_indices = @transform_0, window_bounds = array<i64: 8, 128>}, {pipeline_mode = #tpu.pipeline_mode<synchronous>, transform_indices = @transform_1, window_bounds = array<i64: 128, 512>}, {pipeline_mode = #tpu.pipeline_mode<synchronous>, transform_indices = @transform_2, window_bounds = array<i64: 1, 512>}, {pipeline_mode = #tpu.pipeline_mode<synchronous>, transform_indices = @transform_3, window_bounds = array<i64: 512, 256>}, {pipeline_mode = #tpu.pipeline_mode<synchronous>, transform_indices = @transform_4, window_bounds = array<i64: 1, 256>}, {transform_indices = @transform_5, window_bounds = array<i64: 8, 256>}]} {
    %c0 = arith.constant 0 : index
    %c0_0 = arith.constant 0 : index
    %0 = vector.load %arg1[%c0, %c0_0] : memref<8x128xf32, #tpu.memory_space<vmem>>, vector<8x128xf32>
    %c0_1 = arith.constant 0 : index
    %c0_2 = arith.constant 0 : index
    %1 = vector.load %arg2[%c0_1, %c0_2] : memref<128x512xf32, #tpu.memory_space<vmem>>, vector<128x512xf32>
    %cst = arith.constant dense<0.000000e+00> : vector<8x512xf32>
    %2 = tpu.matmul %0, %1, %cst {dimension_numbers = #tpu.dot_dimension_numbers<[1], [0], [0], [1], [0, 0, 1, 1], [], []>} : vector<8x128xf32>, vector<128x512xf32>, vector<8x512xf32> -> vector<8x512xf32>
    %c0_3 = arith.constant 0 : index
    %c0_4 = arith.constant 0 : index
    %3 = vector.load %arg3[%c0_3, %c0_4] : memref<1x512xf32, #tpu.memory_space<vmem>>, vector<1x512xf32>
    %4 = vector.broadcast %3 : vector<1x512xf32> to vector<8x512xf32>
    %5 = arith.addf %2, %4 : vector<8x512xf32>
    %6 = math.tanh %5 : vector<8x512xf32>
    %c0_5 = arith.constant 0 : index
    %c0_6 = arith.constant 0 : index
    %7 = vector.load %arg4[%c0_5, %c0_6] : memref<512x256xf32, #tpu.memory_space<vmem>>, vector<512x256xf32>
    %cst_7 = arith.constant dense<0.000000e+00> : vector<8x256xf32>
    %8 = tpu.matmul %6, %7, %cst_7 {dimension_numbers = #tpu.dot_dimension_numbers<[1], [0], [0], [1], [0, 0, 1, 1], [], []>} : vector<8x512xf32>, vector<512x256xf32>, vector<8x256xf32> -> vector<8x256xf32>
    %c0_8 = arith.constant 0 : index
    %c0_9 = arith.constant 0 : index
    %9 = vector.load %arg5[%c0_8, %c0_9] : memref<1x256xf32, #tpu.memory_space<vmem>>, vector<1x256xf32>
    %10 = vector.broadcast %9 : vector<1x256xf32> to vector<8x256xf32>
    %11 = arith.addf %8, %10 : vector<8x256xf32>
    %12 = math.tanh %11 : vector<8x256xf32>
    %c0_10 = arith.constant 0 : index
    %c0_11 = arith.constant 0 : index
    %13 = vector.load %arg6[%c0_10, %c0_11] : memref<8x256xf32, #tpu.memory_space<vmem>>, vector<8x256xf32>
    tpu.vector_store %arg6[%c0_10, %c0_11], %12 {strides = array<i32>} : memref<8x256xf32, #tpu.memory_space<vmem>>, vector<8x256xf32>,
    return
  }
  func.func @transform_0(%arg0: i32) -> (i32, i32) {
    %c0_i32 = arith.constant 0 : i32
    %c0_i32_0 = arith.constant 0 : i32
    return %arg0, %c0_i32 : i32, i32
  }
  func.func @transform_1(%arg0: i32) -> (i32, i32) {
    %c0_i32 = arith.constant 0 : i32
    %c0_i32_0 = arith.constant 0 : i32
    %c0_i32_1 = arith.constant 0 : i32
    return %c0_i32, %c0_i32_0 : i32, i32
  }
  func.func @transform_2(%arg0: i32) -> (i32, i32) {
    %c0_i32 = arith.constant 0 : i32
    %c0_i32_0 = arith.constant 0 : i32
    %c0_i32_1 = arith.constant 0 : i32
    return %c0_i32, %c0_i32_0 : i32, i32
  }
  func.func @transform_3(%arg0: i32) -> (i32, i32) {
    %c0_i32 = arith.constant 0 : i32
    %c0_i32_0 = arith.constant 0 : i32
    %c0_i32_1 = arith.constant 0 : i32
    return %c0_i32, %c0_i32_0 : i32, i32
  }
  func.func @transform_4(%arg0: i32) -> (i32, i32) {
    %c0_i32 = arith.constant 0 : i32
    %c0_i32_0 = arith.constant 0 : i32
    %c0_i32_1 = arith.constant 0 : i32
    return %c0_i32, %c0_i32_0 : i32, i32
  }
  func.func @transform_5(%arg0: i32) -> (i32, i32) {
    %c0_i32 = arith.constant 0 : i32
    %c0_i32_0 = arith.constant 0 : i32
    return %arg0, %c0_i32 : i32, i32
  }
}

</mosaic_0001>

<bundles_post_ra>
// kernel: feature_extractor_forward.1
= control target key start
LH: loop header
LB: loop body
LE: loop exit
PB: predicated region body
PF: predicated region fallthrough
CT: control target
= control target key end

     0   :  { %10 = vsyncpa [#allocation3], 0  ;;  %s796_s0 = inlined_call_operand.hbm [shape: f32[8,128], index: 0, kind: input, shape index: {}]   ;;  %s797_s1 = inlined_call_operand.hbm [shape: f32[128,512], index: 1, kind: input, shape index: {}]   ;;  %s798_s2 = inlined_call_operand.hbm [shape: f32[1,512], index: 2, kind: input, shape index: {}]   ;;  %s799_s3 = inlined_call_operand.hbm [shape: f32[512,256], index: 3, kind: input, shape index: {}]   ;;  %s800_s4 = inlined_call_operand.vmem [shape: f32[1,256], index: 4, kind: input, shape index: {}]   ;;  %s801_s5 = inlined_call_operand.hbm [shape: f32[8,256], index: 5, kind: output, shape index: {}]  }
   0x1   :  { %11 = vsyncpa [#allocation6], 0 }
   0x2   :  { %12 = vsyncpa [#allocation9], 0 }
   0x3   :  { %13 = vsyncpa [#allocation4], 0  ;;  %s738_s18 = smov [#allocation5]  }
   0x4   :  { %s29_s19 = sshll.u32 %s738_s18, 4  ;;  %s30_s19 = int_to_ptr.vmem [resolvable:$true] %s29_s19 }
   0x5   :  { %s638_s20 = scalar_lea.vmem %s30_s19, 8192  ;;  %p643_p1 = scmp.lt.s32.totalorder %s30_s19, %s30_s19 }
   0x6   :  { %p639_p0 = scmp.ne.s32.totalorder %s30_s19, %s638_s20  ;;  %p644_p2 = scmp.lt.s32.totalorder %s638_s20, %s638_s20 }
   0x8   :  { %p645_p3 = por %p644_p2, %p643_p1 }
   0xa   :  { %p646_p4 = pnand %p645_p3, %p639_p0 }
   0xc   :  { %649 = shalt.err (!%p646_p4)
}
   0xd   :  { %s739_s21 = smov 512   ;;  %s740_s22 = smov 32  }
   0xe   :  { %35 = dma.hbm_to_vmem [thread:$0]  %s797_s1, 8192, %s30_s19, [#allocation6], %s739_s21, %s739_s21, %s740_s22  }
   0xf   :  { %s741_s25 = smov [#allocation2]   ;;  %s742_s27 = smov [#allocation7]  }
  0x10   :  { %s20_s26 = sshll.u32 %s741_s25, 4  ;;  %s42_s28 = sshll.u32 %s742_s27, 4  ;;  %s21_s26 = int_to_ptr.vmem [resolvable:$true] %s20_s26  ;;  %s43_s28 = int_to_ptr.vmem [resolvable:$true] %s42_s28 }
  0x11   :  { %s658_s29 = scalar_lea.vmem %s21_s26, 128  ;;  %p663_p6 = scmp.lt.s32.totalorder %s21_s26, %s21_s26 }
  0x12   :  { %p659_p5 = scmp.ne.s32.totalorder %s21_s26, %s658_s29  ;;  %p664_p7 = scmp.lt.s32.totalorder %s658_s29, %s658_s29 }
  0x14   :  { %p665_p8 = por %p664_p7, %p663_p6 }
  0x16   :  { %p666_p9 = pnand %p665_p8, %p659_p5 }
  0x18   :  { %669 = shalt.err (!%p666_p9)
}
  0x19   :  { %23 = dma.hbm_to_vmem [thread:$0]  %s796_s0, 128, %s21_s26, [#allocation3]  }
  0x1a   :  { %s678_s7 = scalar_lea.vmem %s43_s28, 64  ;;  %p683_p11 = scmp.lt.s32.totalorder %s43_s28, %s43_s28 }
  0x1b   :  { %p679_p10 = scmp.ne.s32.totalorder %s43_s28, %s678_s7  ;;  %p684_p12 = scmp.lt.s32.totalorder %s678_s7, %s678_s7 }
  0x1d   :  { %p685_p13 = por %p684_p12, %p683_p11 }
  0x1f   :  { %p686_p0 = pnand %p685_p13, %p679_p10 }
  0x21   :  { %689 = shalt.err (!%p686_p0)
}
  0x22   :  { %45 = dma.hbm_to_vmem [thread:$0]  %s798_s2, 64, %s43_s28, [#allocation6]  }
  0x23   :  { %s743_s9 = smov [#allocation8]  }
  0x24   :  { %s51_s10 = sshll.u32 %s743_s9, 4  ;;  %s52_s10 = int_to_ptr.vmem [resolvable:$true] %s51_s10 }
  0x25   :  { %s698_s11 = scalar_lea.vmem %s52_s10, 16384  ;;  %p703_p2 = scmp.lt.s32.totalorder %s52_s10, %s52_s10 }
  0x26   :  { %p699_p1 = scmp.ne.s32.totalorder %s52_s10, %s698_s11  ;;  %p704_p3 = scmp.lt.s32.totalorder %s698_s11, %s698_s11 }
  0x28   :  { %p705_p4 = por %p704_p3, %p703_p2 }
  0x2a   :  { %p706_p5 = pnand %p705_p4, %p699_p1 }
  0x2c   :  { %709 = shalt.err (!%p706_p5)
}
  0x2d   :  { %s744_s0 = smov 256   ;;  %s745_s12 = smov 16  }
  0x2e   :  { %57 = dma.hbm_to_vmem [thread:$0]  %s799_s3, 16384, %s52_s10, [#allocation9], %s744_s0, %s744_s0, %s745_s12  }
  0x2f   :  { %730 = dma.done.wait [#allocation3], 128  }
  0x30   :  { %731 = vsyncadd [#allocation3], 4294967168 }
  0x31   :  { %732 = dma.done.wait [#allocation6], 8256  }
  0x32   :  { %733 = vsyncadd [#allocation6], 4294959040 }
  0x33   :  { %734 = dma.done.wait [#allocation9], 16384  }
  0x34   :  { %735 = vsyncadd [#allocation9], 4294950912  ;;  %v746_v0 = vmov 0.0   ;;  %v134_v1 = vld [vmem:[#allocation5 + $0x1e8] sm:$0xff]  ;;  %v136_v2 = vld [vmem:[#allocation5 + $0x1f8] sm:$0xff]  ;;  %s747_s15 = smov [#allocation10]  }
  0x35   :  { %223 = vmatprep.mubr.f32.mxu0 %v746_v0  ;;  %294 = vmatprep.mubr.f32.mxu1 %v746_v0  ;;  %v133_v3 = vld [vmem:[#allocation5 + $0x1e0] sm:$0xff]  ;;  %v135_v4 = vld [vmem:[#allocation5 + $0x1f0] sm:$0xff]  ;;  %v130_v5 = vld [vmem:[#allocation5 + $0x1c8] sm:$0xff]  ;;  %s597_s16 = sshll.u32 %s747_s15, 4  ;;  %s598_s16 = int_to_ptr.vmem [resolvable:$true] %s597_s16 }
  0x36   :  { %159 = vmatprep.subr.mxu0 %v134_v1  ;;  %230 = vmatprep.subr.mxu1 %v136_v2  ;;  %v132_v6 = vld [vmem:[#allocation5 + $0x1d8] sm:$0xff]  ;;  %v129_v7 = vld [vmem:[#allocation5 + $0x1c0] sm:$0xff]  ;;  %v131_v8 = vld [vmem:[#allocation5 + $0x1d0] sm:$0xff]  ;;  %p715_p7 = scmp.lt.s32.totalorder %s598_s16, %s598_s16 }
  0x37   :  { %160 = vmatpush1.msra.mxu0 %v133_v3  ;;  %231 = vmatpush1.msra.mxu1 %v135_v4  ;;  %v126_v9 = vld [vmem:[#allocation5 + $0x1a8] sm:$0xff]  ;;  %v128_v10 = vld [vmem:[#allocation5 + $0x1b8] sm:$0xff]  ;;  %v125_v11 = vld [vmem:[#allocation5 + $0x1a0] sm:$0xff] }
  0x38   :  { %161 = vmatprep.subr.mxu0 %v130_v5  ;;  %232 = vmatprep.subr.mxu1 %v132_v6  ;;  %v127_v12 = vld [vmem:[#allocation5 + $0x1b0] sm:$0xff]  ;;  %v122_v13 = vld [vmem:[#allocation5 + $0x188] sm:$0xff]  ;;  %v124_v14 = vld [vmem:[#allocation5 + $0x198] sm:$0xff] }
  0x39   :  { %162 = vmatpush1.msra.mxu0 %v129_v7  ;;  %233 = vmatpush1.msra.mxu1 %v131_v8  ;;  %v121_v15 = vld [vmem:[#allocation5 + $0x180] sm:$0xff]  ;;  %v123_v16 = vld [vmem:[#allocation5 + $0x190] sm:$0xff]  ;;  %v118_v17 = vld [vmem:[#allocation5 + $0x168] sm:$0xff] }
  0x3a   :  { %163 = vmatprep.subr.mxu0 %v126_v9  ;;  %234 = vmatprep.subr.mxu1 %v128_v10  ;;  %v120_v18 = vld [vmem:[#allocation5 + $0x178] sm:$0xff]  ;;  %v117_v19 = vld [vmem:[#allocation5 + $0x160] sm:$0xff]  ;;  %v119_v20 = vld [vmem:[#allocation5 + $0x170] sm:$0xff] }
  0x3b   :  { %164 = vmatpush1.msra.mxu0 %v125_v11  ;;  %235 = vmatpush1.msra.mxu1 %v127_v12  ;;  %v114_v21 = vld [vmem:[#allocation5 + $0x148] sm:$0xff]  ;;  %v116_v22 = vld [vmem:[#allocation5 + $0x158] sm:$0xff]  ;;  %v113_v23 = vld [vmem:[#allocation5 + $0x140] sm:$0xff] }
  0x3c   :  { %165 = vmatprep.subr.mxu0 %v122_v13  ;;  %236 = vmatprep.subr.mxu1 %v124_v14  ;;  %v115_v24 = vld [vmem:[#allocation5 + $0x150] sm:$0xff]  ;;  %v110_v25 = vld [vmem:[#allocation5 + $0x128] sm:$0xff]  ;;  %v112_v26 = vld [vmem:[#allocation5 + $0x138] sm:$0xff] }
  0x3d   :  { %166 = vmatpush1.msra.mxu0 %v121_v15  ;;  %237 = vmatpush1.msra.mxu1 %v123_v16  ;;  %v109_v27 = vld [vmem:[#allocation5 + $0x120] sm:$0xff]  ;;  %v111_v28 = vld [vmem:[#allocation5 + $0x130] sm:$0xff]  ;;  %v106_v29 = vld [vmem:[#allocation5 + $0x108] sm:$0xff] }
  0x3e   :  { %167 = vmatprep.subr.mxu0 %v118_v17  ;;  %238 = vmatprep.subr.mxu1 %v120_v18  ;;  %v108_v30 = vld [vmem:[#allocation5 + $0x118] sm:$0xff]  ;;  %v105_v31 = vld [vmem:[#allocation5 + $0x100] sm:$0xff]  ;;  %v107_v32 = vld [vmem:[#allocation5 + $0x110] sm:$0xff] }
  0x3f   :  { %168 = vmatpush1.msra.mxu0 %v117_v19  ;;  %239 = vmatpush1.msra.mxu1 %v119_v20  ;;  %v102_v33 = vld [vmem:[#allocation5 + $0xe8] sm:$0xff]  ;;  %v104_v34 = vld [vmem:[#allocation5 + $0xf8] sm:$0xff]  ;;  %v101_v35 = vld [vmem:[#allocation5 + $0xe0] sm:$0xff] }
  0x40   :  { %169 = vmatprep.subr.mxu0 %v114_v21  ;;  %240 = vmatprep.subr.mxu1 %v116_v22  ;;  %v103_v36 = vld [vmem:[#allocation5 + $0xf0] sm:$0xff]  ;;  %v98_v37 = vld [vmem:[#allocation5 + $0xc8] sm:$0xff]  ;;  %v100_v38 = vld [vmem:[#allocation5 + $0xd8] sm:$0xff] }
  0x41   :  { %170 = vmatpush1.msra.mxu0 %v113_v23  ;;  %241 = vmatpush1.msra.mxu1 %v115_v24  ;;  %v97_v39 = vld [vmem:[#allocation5 + $0xc0] sm:$0xff]  ;;  %v99_v40 = vld [vmem:[#allocation5 + $0xd0] sm:$0xff]  ;;  %v94_v41 = vld [vmem:[#allocation5 + $0xa8] sm:$0xff] }
  0x42   :  { %171 = vmatprep.subr.mxu0 %v110_v25  ;;  %242 = vmatprep.subr.mxu1 %v112_v26  ;;  %v96_v42 = vld [vmem:[#allocation5 + $0xb8] sm:$0xff]  ;;  %v93_v43 = vld [vmem:[#allocation5 + $0xa0] sm:$0xff]  ;;  %v95_v44 = vld [vmem:[#allocation5 + $0xb0] sm:$0xff] }
  0x43   :  { %172 = vmatpush1.msra.mxu0 %v109_v27  ;;  %243 = vmatpush1.msra.mxu1 %v111_v28  ;;  %v90_v45 = vld [vmem:[#allocation5 + $0x88] sm:$0xff]  ;;  %v92_v46 = vld [vmem:[#allocation5 + $0x98] sm:$0xff]  ;;  %v89_v47 = vld [vmem:[#allocation5 + $0x80] sm:$0xff] }
  0x44   :  { %173 = vmatprep.subr.mxu0 %v106_v29  ;;  %244 = vmatprep.subr.mxu1 %v108_v30  ;;  %v91_v48 = vld [vmem:[#allocation5 + $0x90] sm:$0xff]  ;;  %v86_v49 = vld [vmem:[#allocation5 + $0x68] sm:$0xff]  ;;  %v88_v50 = vld [vmem:[#allocation5 + $0x78] sm:$0xff] }
  0x45   :  { %174 = vmatpush1.msra.mxu0 %v105_v31  ;;  %245 = vmatpush1.msra.mxu1 %v107_v32  ;;  %v85_v51 = vld [vmem:[#allocation5 + $0x60] sm:$0xff]  ;;  %v87_v52 = vld [vmem:[#allocation5 + $0x70] sm:$0xff]  ;;  %v82_v53 = vld [vmem:[#allocation5 + $0x48] sm:$0xff] }
  0x46   :  { %175 = vmatprep.subr.mxu0 %v102_v33  ;;  %246 = vmatprep.subr.mxu1 %v104_v34  ;;  %v84_v54 = vld [vmem:[#allocation5 + $0x58] sm:$0xff]  ;;  %v81_v55 = vld [vmem:[#allocation5 + $0x40] sm:$0xff]  ;;  %v83_v56 = vld [vmem:[#allocation5 + $0x50] sm:$0xff] }
  0x47   :  { %176 = vmatpush1.msra.mxu0 %v101_v35  ;;  %247 = vmatpush1.msra.mxu1 %v103_v36  ;;  %v78_v57 = vld [vmem:[#allocation5 + $0x28] sm:$0xff]  ;;  %v80_v58 = vld [vmem:[#allocation5 + $0x38] sm:$0xff]  ;;  %v77_v59 = vld [vmem:[#allocation5 + $0x20] sm:$0xff] }
  0x48   :  { %177 = vmatprep.subr.mxu0 %v98_v37  ;;  %248 = vmatprep.subr.mxu1 %v100_v38  ;;  %v79_v60 = vld [vmem:[#allocation5 + $0x30] sm:$0xff]  ;;  %v74_v61 = vld [vmem:[#allocation5 + $0x8] sm:$0xff]  ;;  %v76_v62 = vld [vmem:[#allocation5 + $0x18] sm:$0xff] }
  0x49   :  { %178 = vmatpush1.msra.mxu0 %v97_v39  ;;  %249 = vmatpush1.msra.mxu1 %v99_v40  ;;  %v73_v63 = vld [vmem:[#allocation5] sm:$0xff]  ;;  %v75_v0 = vld [vmem:[#allocation5 + $0x10] sm:$0xff]  ;;  %v72_v1 = vld [vmem:[#allocation2] sm:$0xff] }
  0x4a   :  { %179 = vmatprep.subr.mxu0 %v94_v41  ;;  %250 = vmatprep.subr.mxu1 %v96_v42  ;;  %v336_v2 = vld [vmem:[#allocation8 + $0xf8] sm:$0xff]  ;;  %v335_v4 = vld [vmem:[#allocation8 + $0xf0] sm:$0xff]  ;;  %v334_v6 = vld [vmem:[#allocation8 + $0xe8] sm:$0xff] }
  0x4b   :  { %180 = vmatpush1.msra.mxu0 %v93_v43  ;;  %251 = vmatpush1.msra.mxu1 %v95_v44  ;;  %v400_v3 = vld [vmem:[#allocation8 + $0x2f8] sm:$0xff]  ;;  %v399_v5 = vld [vmem:[#allocation8 + $0x2f0] sm:$0xff]  ;;  %v398_v7 = vld [vmem:[#allocation8 + $0x2e8] sm:$0xff] }
  0x4c   :  { %181 = vmatprep.subr.mxu0 %v90_v45  ;;  %252 = vmatprep.subr.mxu1 %v92_v46  ;;  %v333_v8 = vld [vmem:[#allocation8 + $0xe0] sm:$0xff]  ;;  %v332_v10 = vld [vmem:[#allocation8 + $0xd8] sm:$0xff]  ;;  %v331_v12 = vld [vmem:[#allocation8 + $0xd0] sm:$0xff] }
  0x4d   :  { %182 = vmatpush1.msra.mxu0 %v89_v47  ;;  %253 = vmatpush1.msra.mxu1 %v91_v48  ;;  %v397_v9 = vld [vmem:[#allocation8 + $0x2e0] sm:$0xff]  ;;  %v396_v11 = vld [vmem:[#allocation8 + $0x2d8] sm:$0xff]  ;;  %v395_v13 = vld [vmem:[#allocation8 + $0x2d0] sm:$0xff] }
  0x4e   :  { %183 = vmatprep.subr.mxu0 %v86_v49  ;;  %254 = vmatprep.subr.mxu1 %v88_v50  ;;  %v330_v14 = vld [vmem:[#allocation8 + $0xc8] sm:$0xff]  ;;  %v329_v16 = vld [vmem:[#allocation8 + $0xc0] sm:$0xff]  ;;  %v328_v18 = vld [vmem:[#allocation8 + $0xb8] sm:$0xff] }
  0x4f   :  { %184 = vmatpush1.msra.mxu0 %v85_v51  ;;  %255 = vmatpush1.msra.mxu1 %v87_v52  ;;  %v394_v15 = vld [vmem:[#allocation8 + $0x2c8] sm:$0xff]  ;;  %v393_v17 = vld [vmem:[#allocation8 + $0x2c0] sm:$0xff]  ;;  %v392_v19 = vld [vmem:[#allocation8 + $0x2b8] sm:$0xff] }
  0x50   :  { %185 = vmatprep.subr.mxu0 %v82_v53  ;;  %256 = vmatprep.subr.mxu1 %v84_v54  ;;  %v327_v20 = vld [vmem:[#allocation8 + $0xb0] sm:$0xff]  ;;  %v326_v22 = vld [vmem:[#allocation8 + $0xa8] sm:$0xff]  ;;  %v325_v24 = vld [vmem:[#allocation8 + $0xa0] sm:$0xff] }
  0x51   :  { %186 = vmatpush1.msra.mxu0 %v81_v55  ;;  %257 = vmatpush1.msra.mxu1 %v83_v56  ;;  %v391_v21 = vld [vmem:[#allocation8 + $0x2b0] sm:$0xff]  ;;  %v390_v23 = vld [vmem:[#allocation8 + $0x2a8] sm:$0xff]  ;;  %v389_v25 = vld [vmem:[#allocation8 + $0x2a0] sm:$0xff] }
  0x52   :  { %187 = vmatprep.subr.mxu0 %v78_v57  ;;  %258 = vmatprep.subr.mxu1 %v80_v58  ;;  %v324_v26 = vld [vmem:[#allocation8 + $0x98] sm:$0xff]  ;;  %v323_v28 = vld [vmem:[#allocation8 + $0x90] sm:$0xff]  ;;  %v322_v30 = vld [vmem:[#allocation8 + $0x88] sm:$0xff] }
  0x53   :  { %188 = vmatpush1.msra.mxu0 %v77_v59  ;;  %259 = vmatpush1.msra.mxu1 %v79_v60  ;;  %v388_v27 = vld [vmem:[#allocation8 + $0x298] sm:$0xff]  ;;  %v387_v29 = vld [vmem:[#allocation8 + $0x290] sm:$0xff]  ;;  %v386_v31 = vld [vmem:[#allocation8 + $0x288] sm:$0xff] }
  0x54   :  { %189 = vmatprep.subr.mxu0 %v74_v61  ;;  %260 = vmatprep.subr.mxu1 %v76_v62  ;;  %v321_v32 = vld [vmem:[#allocation8 + $0x80] sm:$0xff]  ;;  %v320_v34 = vld [vmem:[#allocation8 + $0x78] sm:$0xff]  ;;  %v319_v36 = vld [vmem:[#allocation8 + $0x70] sm:$0xff] }
  0x55   :  { %190 = vmatpush1.msra.mxu0 %v73_v63  ;;  %261 = vmatpush1.msra.mxu1 %v75_v0  ;;  %v385_v33 = vld [vmem:[#allocation8 + $0x280] sm:$0xff]  ;;  %v384_v35 = vld [vmem:[#allocation8 + $0x278] sm:$0xff]  ;;  %v383_v37 = vld [vmem:[#allocation8 + $0x270] sm:$0xff] }
  0x56   :  { %224 = vmatmul.mubr.f32.vlgmr.msra.gmra.mxu0 %v72_v1  ;;  %295 = vmatmul.mubr.f32.vlgmr.msra.gmra.mxu1 %v72_v1  ;;  %v318_v38 = vld [vmem:[#allocation8 + $0x68] sm:$0xff]  ;;  %v317_v40 = vld [vmem:[#allocation8 + $0x60] sm:$0xff]  ;;  %v316_v42 = vld [vmem:[#allocation8 + $0x58] sm:$0xff] }
  0x57   :  { %445 = vmatprep.subr.mxu0 %v336_v2  ;;  %516 = vmatprep.subr.mxu1 %v400_v3  ;;  %v382_v39 = vld [vmem:[#allocation8 + $0x268] sm:$0xff]  ;;  %v381_v41 = vld [vmem:[#allocation8 + $0x260] sm:$0xff]  ;;  %v380_v43 = vld [vmem:[#allocation8 + $0x258] sm:$0xff] }
  0x58   :  { %446 = vmatpush1.msra.mxu0 %v335_v4  ;;  %517 = vmatpush1.msra.mxu1 %v399_v5  ;;  %v315_v44 = vld [vmem:[#allocation8 + $0x50] sm:$0xff]  ;;  %v314_v46 = vld [vmem:[#allocation8 + $0x48] sm:$0xff]  ;;  %v313_v48 = vld [vmem:[#allocation8 + $0x40] sm:$0xff] }
  0x59   :  { %447 = vmatprep.subr.mxu0 %v334_v6  ;;  %518 = vmatprep.subr.mxu1 %v398_v7  ;;  %v379_v45 = vld [vmem:[#allocation8 + $0x250] sm:$0xff]  ;;  %v378_v47 = vld [vmem:[#allocation8 + $0x248] sm:$0xff]  ;;  %v377_v49 = vld [vmem:[#allocation8 + $0x240] sm:$0xff] }
  0x5a   :  { %448 = vmatpush1.msra.mxu0 %v333_v8  ;;  %519 = vmatpush1.msra.mxu1 %v397_v9  ;;  %v312_v50 = vld [vmem:[#allocation8 + $0x38] sm:$0xff]  ;;  %v311_v52 = vld [vmem:[#allocation8 + $0x30] sm:$0xff]  ;;  %v310_v54 = vld [vmem:[#allocation8 + $0x28] sm:$0xff] }
  0x5b   :  { %449 = vmatprep.subr.mxu0 %v332_v10  ;;  %520 = vmatprep.subr.mxu1 %v396_v11  ;;  %v376_v51 = vld [vmem:[#allocation8 + $0x238] sm:$0xff]  ;;  %v375_v53 = vld [vmem:[#allocation8 + $0x230] sm:$0xff]  ;;  %v374_v55 = vld [vmem:[#allocation8 + $0x228] sm:$0xff] }
  0x5c   :  { %450 = vmatpush1.msra.mxu0 %v331_v12  ;;  %521 = vmatpush1.msra.mxu1 %v395_v13  ;;  %v309_v56 = vld [vmem:[#allocation8 + $0x20] sm:$0xff]  ;;  %v308_v58 = vld [vmem:[#allocation8 + $0x18] sm:$0xff]  ;;  %v307_v60 = vld [vmem:[#allocation8 + $0x10] sm:$0xff] }
  0x5d   :  { %451 = vmatprep.subr.mxu0 %v330_v14  ;;  %522 = vmatprep.subr.mxu1 %v394_v15  ;;  %v373_v57 = vld [vmem:[#allocation8 + $0x220] sm:$0xff]  ;;  %v372_v59 = vld [vmem:[#allocation8 + $0x218] sm:$0xff]  ;;  %v371_v61 = vld [vmem:[#allocation8 + $0x210] sm:$0xff] }
  0x5e   :  { %452 = vmatpush1.msra.mxu0 %v329_v16  ;;  %523 = vmatpush1.msra.mxu1 %v393_v17  ;;  %v306_v62 = vld [vmem:[#allocation8 + $0x8] sm:$0xff]  ;;  %v305_v0 = vld [vmem:[#allocation8] sm:$0xff]  ;;  %v368_v2 = vld [vmem:[#allocation8 + $0x1f8] sm:$0xff] }
  0x5f   :  { %453 = vmatprep.subr.mxu0 %v328_v18  ;;  %524 = vmatprep.subr.mxu1 %v392_v19  ;;  %v370_v63 = vld [vmem:[#allocation8 + $0x208] sm:$0xff]  ;;  %v369_v1 = vld [vmem:[#allocation8 + $0x200] sm:$0xff]  ;;  %v432_v3 = vld [vmem:[#allocation8 + $0x3f8] sm:$0xff] }
  0x60   :  { %454 = vmatpush1.msra.mxu0 %v327_v20  ;;  %525 = vmatpush1.msra.mxu1 %v391_v21  ;;  %v367_v4 = vld [vmem:[#allocation8 + $0x1f0] sm:$0xff]  ;;  %v366_v6 = vld [vmem:[#allocation8 + $0x1e8] sm:$0xff]  ;;  %v365_v8 = vld [vmem:[#allocation8 + $0x1e0] sm:$0xff] }
  0x61   :  { %455 = vmatprep.subr.mxu0 %v326_v22  ;;  %526 = vmatprep.subr.mxu1 %v390_v23  ;;  %v431_v5 = vld [vmem:[#allocation8 + $0x3f0] sm:$0xff]  ;;  %v430_v7 = vld [vmem:[#allocation8 + $0x3e8] sm:$0xff]  ;;  %v429_v9 = vld [vmem:[#allocation8 + $0x3e0] sm:$0xff] }
  0x62   :  { %456 = vmatpush1.msra.mxu0 %v325_v24  ;;  %527 = vmatpush1.msra.mxu1 %v389_v25  ;;  %v364_v10 = vld [vmem:[#allocation8 + $0x1d8] sm:$0xff]  ;;  %v363_v12 = vld [vmem:[#allocation8 + $0x1d0] sm:$0xff]  ;;  %v362_v14 = vld [vmem:[#allocation8 + $0x1c8] sm:$0xff] }
  0x63   :  { %457 = vmatprep.subr.mxu0 %v324_v26  ;;  %528 = vmatprep.subr.mxu1 %v388_v27  ;;  %v428_v11 = vld [vmem:[#allocation8 + $0x3d8] sm:$0xff]  ;;  %v427_v13 = vld [vmem:[#allocation8 + $0x3d0] sm:$0xff]  ;;  %v426_v15 = vld [vmem:[#allocation8 + $0x3c8] sm:$0xff] }
  0x64   :  { %458 = vmatpush1.msra.mxu0 %v323_v28  ;;  %529 = vmatpush1.msra.mxu1 %v387_v29  ;;  %v361_v16 = vld [vmem:[#allocation8 + $0x1c0] sm:$0xff]  ;;  %v360_v18 = vld [vmem:[#allocation8 + $0x1b8] sm:$0xff]  ;;  %v359_v20 = vld [vmem:[#allocation8 + $0x1b0] sm:$0xff] }
  0x65   :  { %459 = vmatprep.subr.mxu0 %v322_v30  ;;  %530 = vmatprep.subr.mxu1 %v386_v31  ;;  %v425_v17 = vld [vmem:[#allocation8 + $0x3c0] sm:$0xff]  ;;  %v424_v19 = vld [vmem:[#allocation8 + $0x3b8] sm:$0xff]  ;;  %v423_v21 = vld [vmem:[#allocation8 + $0x3b0] sm:$0xff] }
  0x66   :  { %460 = vmatpush1.msra.mxu0 %v321_v32  ;;  %531 = vmatpush1.msra.mxu1 %v385_v33  ;;  %v358_v22 = vld [vmem:[#allocation8 + $0x1a8] sm:$0xff]  ;;  %v357_v24 = vld [vmem:[#allocation8 + $0x1a0] sm:$0xff]  ;;  %v356_v26 = vld [vmem:[#allocation8 + $0x198] sm:$0xff] }
  0x67   :  { %461 = vmatprep.subr.mxu0 %v320_v34  ;;  %532 = vmatprep.subr.mxu1 %v384_v35  ;;  %v422_v23 = vld [vmem:[#allocation8 + $0x3a8] sm:$0xff]  ;;  %v421_v25 = vld [vmem:[#allocation8 + $0x3a0] sm:$0xff]  ;;  %v420_v27 = vld [vmem:[#allocation8 + $0x398] sm:$0xff] }
  0x68   :  { %462 = vmatpush1.msra.mxu0 %v319_v36  ;;  %533 = vmatpush1.msra.mxu1 %v383_v37  ;;  %v355_v28 = vld [vmem:[#allocation8 + $0x190] sm:$0xff]  ;;  %v354_v30 = vld [vmem:[#allocation8 + $0x188] sm:$0xff]  ;;  %v353_v32 = vld [vmem:[#allocation8 + $0x180] sm:$0xff] }
  0x69   :  { %463 = vmatprep.subr.mxu0 %v318_v38  ;;  %534 = vmatprep.subr.mxu1 %v382_v39  ;;  %v419_v29 = vld [vmem:[#allocation8 + $0x390] sm:$0xff]  ;;  %v418_v31 = vld [vmem:[#allocation8 + $0x388] sm:$0xff]  ;;  %v417_v33 = vld [vmem:[#allocation8 + $0x380] sm:$0xff] }
  0x6a   :  { %464 = vmatpush1.msra.mxu0 %v317_v40  ;;  %535 = vmatpush1.msra.mxu1 %v381_v41  ;;  %v352_v34 = vld [vmem:[#allocation8 + $0x178] sm:$0xff]  ;;  %v351_v36 = vld [vmem:[#allocation8 + $0x170] sm:$0xff]  ;;  %v350_v38 = vld [vmem:[#allocation8 + $0x168] sm:$0xff] }
  0x6b   :  { %465 = vmatprep.subr.mxu0 %v316_v42  ;;  %536 = vmatprep.subr.mxu1 %v380_v43  ;;  %v416_v35 = vld [vmem:[#allocation8 + $0x378] sm:$0xff]  ;;  %v415_v37 = vld [vmem:[#allocation8 + $0x370] sm:$0xff]  ;;  %v414_v39 = vld [vmem:[#allocation8 + $0x368] sm:$0xff] }
  0x6c   :  { %466 = vmatpush1.msra.mxu0 %v315_v44  ;;  %537 = vmatpush1.msra.mxu1 %v379_v45  ;;  %v349_v40 = vld [vmem:[#allocation8 + $0x160] sm:$0xff]  ;;  %v348_v42 = vld [vmem:[#allocation8 + $0x158] sm:$0xff]  ;;  %v347_v44 = vld [vmem:[#allocation8 + $0x150] sm:$0xff] }
  0x6d   :  { %467 = vmatprep.subr.mxu0 %v314_v46  ;;  %538 = vmatprep.subr.mxu1 %v378_v47  ;;  %v413_v41 = vld [vmem:[#allocation8 + $0x360] sm:$0xff]  ;;  %v412_v43 = vld [vmem:[#allocation8 + $0x358] sm:$0xff]  ;;  %v411_v45 = vld [vmem:[#allocation8 + $0x350] sm:$0xff] }
  0x6e   :  { %468 = vmatpush1.msra.mxu0 %v313_v48  ;;  %539 = vmatpush1.msra.mxu1 %v377_v49  ;;  %v346_v46 = vld [vmem:[#allocation8 + $0x148] sm:$0xff]  ;;  %v345_v48 = vld [vmem:[#allocation8 + $0x140] sm:$0xff] }
  0x6f   :  { %469 = vmatprep.subr.mxu0 %v312_v50  ;;  %540 = vmatprep.subr.mxu1 %v376_v51  ;;  %v410_v47 = vld [vmem:[#allocation8 + $0x348] sm:$0xff]  ;;  %v409_v49 = vld [vmem:[#allocation8 + $0x340] sm:$0xff]  ;;  %v344_v50 = vld [vmem:[#allocation8 + $0x138] sm:$0xff] }
  0x70   :  { %470 = vmatpush1.msra.mxu0 %v311_v52  ;;  %541 = vmatpush1.msra.mxu1 %v375_v53  ;;  %v408_v51 = vld [vmem:[#allocation8 + $0x338] sm:$0xff]  ;;  %v343_v52 = vld [vmem:[#allocation8 + $0x130] sm:$0xff] }
  0x71   :  { %471 = vmatprep.subr.mxu0 %v310_v54  ;;  %542 = vmatprep.subr.mxu1 %v374_v55  ;;  %v407_v53 = vld [vmem:[#allocation8 + $0x330] sm:$0xff]  ;;  %v342_v54 = vld [vmem:[#allocation8 + $0x128] sm:$0xff] }
  0x72   :  { %472 = vmatpush1.msra.mxu0 %v309_v56  ;;  %543 = vmatpush1.msra.mxu1 %v373_v57  ;;  %v406_v55 = vld [vmem:[#allocation8 + $0x328] sm:$0xff]  ;;  %v341_v56 = vld [vmem:[#allocation8 + $0x120] sm:$0xff] }
  0x73   :  { %473 = vmatprep.subr.mxu0 %v308_v58  ;;  %544 = vmatprep.subr.mxu1 %v372_v59  ;;  %v405_v57 = vld [vmem:[#allocation8 + $0x320] sm:$0xff]  ;;  %v340_v58 = vld [vmem:[#allocation8 + $0x118] sm:$0xff] }
  0x74   :  { %474 = vmatpush1.msra.mxu0 %v307_v60  ;;  %545 = vmatpush1.msra.mxu1 %v371_v61  ;;  %v404_v59 = vld [vmem:[#allocation8 + $0x318] sm:$0xff]  ;;  %v339_v60 = vld [vmem:[#allocation8 + $0x110] sm:$0xff] }
  0x75   :  { %475 = vmatprep.subr.mxu0 %v306_v62  ;;  %546 = vmatprep.subr.mxu1 %v370_v63  ;;  %v403_v61 = vld [vmem:[#allocation8 + $0x310] sm:$0xff]  ;;  %v338_v62 = vld [vmem:[#allocation8 + $0x108] sm:$0xff] }
  0x76   :  { %476 = vmatpush1.msra.mxu0 %v305_v0  ;;  %547 = vmatpush1.msra.mxu1 %v369_v1  ;;  %v402_v63 = vld [vmem:[#allocation8 + $0x308] sm:$0xff]  ;;  %v337_v0 = vld [vmem:[#allocation8 + $0x100] sm:$0xff] }
  0x77   :  { %477 = vmatprep.subr.mxu0 %v368_v2  ;;  %548 = vmatprep.subr.mxu1 %v432_v3  ;;  %v401_v1 = vld [vmem:[#allocation8 + $0x300] sm:$0xff]  ;;  %v139_v2 = vlaneseq }
  0x78   :  { %478 = vmatpush2.msra.mxu0 %v367_v4  ;;  %549 = vmatpush2.msra.mxu1 %v431_v5 }
  0x79   :  { %479 = vmatprep.subr.mxu0 %v366_v6  ;;  %550 = vmatprep.subr.mxu1 %v430_v7  ;;  %v140_v3 = vshrl.u32 %v139_v2, 7  ;;  %v137_v6 = vld [vmem:[#allocation7] sm:$0xf] }
  0x7a   :  { %480 = vmatpush2.msra.mxu0 %v365_v8  ;;  %551 = vmatpush2.msra.mxu1 %v429_v9 }
  0x7b   :  { %481 = vmatprep.subr.mxu0 %v364_v10  ;;  %552 = vmatprep.subr.mxu1 %v428_v11  ;;  %v141_v4 = vsub.s32 0, %v140_v3  ;;  %v149_v5 = vsub.s32 2, %v140_v3  ;;  %v145_v7 = vsub.s32 1, %v140_v3  ;;  %v153_v8 = vsub.s32 3, %v140_v3 }
  0x7c   :  { %482 = vmatpush2.msra.mxu0 %v363_v12  ;;  %553 = vmatpush2.msra.mxu1 %v427_v13 }
  0x7d   :  { %483 = vmatprep.subr.mxu0 %v362_v14  ;;  %554 = vmatprep.subr.mxu1 %v426_v15  ;;  %v142_v9 = vrot.slane %v137_v6, %v141_v4  ;;  %v150_v10 = vrot.slane %v137_v6, %v149_v5  ;;  %v146_v11 = vrot.slane %v137_v6, %v145_v7 }
  0x7e   :  { %484 = vmatpush2.msra.mxu0 %v361_v16  ;;  %555 = vmatpush2.msra.mxu1 %v425_v17  ;;  %v154_v12 = vrot.slane %v137_v6, %v153_v8 }
  0x7f   :  { %485 = vmatprep.subr.mxu0 %v360_v18  ;;  %556 = vmatprep.subr.mxu1 %v424_v19 }
  0x80   :  { %486 = vmatpush2.msra.mxu0 %v359_v20  ;;  %557 = vmatpush2.msra.mxu1 %v423_v21 }
  0x81   :  { %487 = vmatprep.subr.mxu0 %v358_v22  ;;  %558 = vmatprep.subr.mxu1 %v422_v23 }
  0x82   :  { %488 = vmatpush2.msra.mxu0 %v357_v24  ;;  %559 = vmatpush2.msra.mxu1 %v421_v25  ;;  %v433_v25 = vld [vmem:[%s800_s4] sm:$0x3]  ;;  %s710_s4 = scalar_lea.vmem %s598_s16, 256 }
  0x83   :  { %489 = vmatprep.subr.mxu0 %v356_v26  ;;  %560 = vmatprep.subr.mxu1 %v420_v27  ;;  %v438_v26 = vrot.slane %v433_v25, %v141_v4  ;;  %v442_v27 = vrot.slane %v433_v25, %v145_v7  ;;  %p711_p6 = scmp.ne.s32.totalorder %s598_s16, %s710_s4  ;;  %p716_p8 = scmp.lt.s32.totalorder %s710_s4, %s710_s4 }
  0x84   :  { %490 = vmatpush2.msra.mxu0 %v355_v28  ;;  %561 = vmatpush2.msra.mxu1 %v419_v29 }
  0x85   :  { %491 = vmatprep.subr.mxu0 %v354_v30  ;;  %562 = vmatprep.subr.mxu1 %v418_v31  ;;  %p717_p9 = por %p716_p8, %p715_p7 }
  0x86   :  { %492 = vmatpush2.msra.mxu0 %v353_v32  ;;  %563 = vmatpush2.msra.mxu1 %v417_v33 }
  0x87   :  { %493 = vmatprep.subr.mxu0 %v352_v34  ;;  %564 = vmatprep.subr.mxu1 %v416_v35  ;;  %p718_p10 = pnand %p717_p9, %p711_p6 }
  0x88   :  { %494 = vmatpush2.msra.mxu0 %v351_v36  ;;  %565 = vmatpush2.msra.mxu1 %v415_v37 }
  0x89   :  { %495 = vmatprep.subr.mxu0 %v350_v38  ;;  %566 = vmatprep.subr.mxu1 %v414_v39 }
  0x8a   :  { %496 = vmatpush2.msra.mxu0 %v349_v40  ;;  %567 = vmatpush2.msra.mxu1 %v413_v41 }
  0x8b   :  { %497 = vmatprep.subr.mxu0 %v348_v42  ;;  %568 = vmatprep.subr.mxu1 %v412_v43 }
  0x8c   :  { %498 = vmatpush2.msra.mxu0 %v347_v44  ;;  %569 = vmatpush2.msra.mxu1 %v411_v45 }
  0x8d   :  { %499 = vmatprep.subr.mxu0 %v346_v46  ;;  %570 = vmatprep.subr.mxu1 %v410_v47 }
  0x8e   :  { %500 = vmatpush2.msra.mxu0 %v345_v48  ;;  %571 = vmatpush2.msra.mxu1 %v409_v49 }
  0x8f   :  { %501 = vmatprep.subr.mxu0 %v344_v50  ;;  %572 = vmatprep.subr.mxu1 %v408_v51 }
  0x90   :  { %502 = vmatpush2.msra.mxu0 %v343_v52  ;;  %573 = vmatpush2.msra.mxu1 %v407_v53 }
  0x91   :  { %503 = vmatprep.subr.mxu0 %v342_v54  ;;  %574 = vmatprep.subr.mxu1 %v406_v55 }
  0x92   :  { %504 = vmatpush2.msra.mxu0 %v341_v56  ;;  %575 = vmatpush2.msra.mxu1 %v405_v57 }
  0x93   :  { %505 = vmatprep.subr.mxu0 %v340_v58  ;;  %576 = vmatprep.subr.mxu1 %v404_v59 }
  0x94   :  { %506 = vmatpush2.msra.mxu0 %v339_v60  ;;  %577 = vmatpush2.msra.mxu1 %v403_v61 }
  0x95   :  { %507 = vmatprep.subr.mxu0 %v338_v62  ;;  %578 = vmatprep.subr.mxu1 %v402_v63 }
  0x96   :  { %508 = vmatpush2.msra.mxu0 %v337_v0  ;;  %579 = vmatpush2.msra.mxu1 %v401_v1 }
 0x116   :  { %v225_v13 = vpop.f32.mrf.mxu0  ;;  %v296_v14 = vpop.f32.mrf.mxu1 }
 0x117   :  { %v226_v15 = vadd.f32 %v225_v13, %v142_v9  ;;  %v297_v16 = vadd.f32 %v296_v14, %v150_v10 }
 0x118   :  { %v227_v17 = vpop.f32.mrf.mxu0  ;;  %v298_v18 = vpop.f32.mrf.mxu1 }
 0x119   :  { %618 = vtanh.f32 %v226_v15  ;;  %v228_v19 = vadd.f32 %v227_v17, %v146_v11  ;;  %v299_v20 = vadd.f32 %v298_v18, %v154_v12 }
 0x11a   :  { %620 = vtanh.f32 %v297_v16 }
 0x11b   :  { %622 = vtanh.f32 %v228_v19 }
 0x11c   :  { %624 = vtanh.f32 %v299_v20 }
 0x126   :  { %v619_v21 = vpop.eup %618 }
 0x127   :  { %v621_v22 = vpop.eup %620 }
 0x128   :  { %v623_v23 = vpop.eup %622 }
 0x129   :  { %v625_v24 = vpop.eup %624  ;;  %509 = vmatprep.mubr.f32.mxu0 %v623_v23 }
 0x12a   :  { %580 = vmatprep.mubr.f32.mxu1 %v625_v24  ;;  %510 = vmatmul.mubr.f32.vlgmr.msra.gmra.mxu0 %v619_v21 }
 0x12b   :  { %581 = vmatmul.mubr.f32.vlgmr.msra.gmra.mxu1 %v621_v22 }
 0x1ea   :  { %v511_v28 = vpop.f32.mrf.mxu0 }
 0x1eb   :  { %v512_v29 = vadd.f32 %v511_v28, %v438_v26  ;;  %v582_v30 = vpop.f32.mrf.mxu1 }
 0x1ec   :  { %v513_v31 = vpop.f32.mrf.mxu0 }
 0x1ed   :  { %v583_v32 = vadd.f32 %v582_v30, %v512_v29  ;;  %v514_v33 = vadd.f32 %v513_v31, %v442_v27  ;;  %v584_v34 = vpop.f32.mrf.mxu1 }
 0x1ef   :  { %626 = vtanh.f32 %v583_v32  ;;  %v585_v35 = vadd.f32 %v584_v34, %v514_v33 }
 0x1f1   :  { %628 = vtanh.f32 %v585_v35 }
 0x1fc   :  { %v627_v36 = vpop.eup %626 }
 0x1fd   :  { %589 = vst [vmem:[#allocation10] sm:$0xff] %v627_v36 }
 0x1fe   :  { %v629_v37 = vpop.eup %628 }
 0x1ff   :  { %590 = vst [vmem:[#allocation10 + $0x8] sm:$0xff] %v629_v37 }
 0x200   :  { %721 = shalt.err (!%p718_p10)
}
 0x201   :  { %600 = dma.vmem_to_hbm [thread:$0]  %s598_s16, 256, %s801_s5, [#allocation4]  }
 0x202   :  { %736 = dma.done.wait [#allocation4], 256  }
 0x203   :  { %737 = vsyncadd [#allocation4], 4294967040 }
 0x204   :  { %604 = vsyncpa [#allocation3], 1 }
 0x205   :  { %605 = vsyncpa [#allocation6], 1 }
 0x206   :  { %606 = vsyncpa [#allocation9], 1 }
 0x207   :  { %607 = vsyncpa [#allocation4], 1 }

</bundles_post_ra>
